<compile_context>
chip_gen: v7x
topology: tpu7x:2x2x1
jax: 0.10.0
libtpu: 0.0.40
codegen_flags: <defaults>
</compile_context>

<pallas_src>
import functools
import math

import jax
import jax.numpy as jnp
from jax.experimental import pallas as pl
from jax.experimental.pallas import tpu as pltpu

_SQRT_2_OVER_PI = math.sqrt(2.0 / math.pi)


def _round_up(n, m):
    return ((n + m - 1) // m) * m


# ----------------------------------------------------------------------------
# Device introspection (cached once).
# ----------------------------------------------------------------------------
@functools.lru_cache(maxsize=1)
def _device_kind():
    try:
        return jax.devices()[0].device_kind.lower()
    except Exception:
        return ""


def _is_v7x():
    k = _device_kind()
    return ("v7" in k) or ("7x" in k)


def default_gelu_in_bf16():
    """bf16 VPU/EUP only exists on v6e / v7x; keep f32 GELU elsewhere (v5e...)."""
    k = _device_kind()
    return ("v6" in k) or _is_v7x()


@functools.lru_cache(maxsize=1)
def _vmem_limit_bytes():
    try:
        cap = pltpu.get_tpu_info().vmem_capacity_bytes
    except Exception:
        cap = (64 << 20) if _is_v7x() else (128 << 20)
    # Leave headroom for the compiler's internal scratch.
    return max(32 << 20, cap - (24 << 20))


# ----------------------------------------------------------------------------
# Kernel.
# ----------------------------------------------------------------------------
def _make_mlp_kernel(gelu_in_bf16):
    def kernel(x_ref, w1_ref, b1_ref, w2_ref, b2_ref, o_ref):
        # x_ref:  (tm, Hp)  f32 token tile  (cast to bf16 in-kernel: no wrapper pass)
        # w1_ref: (Hp, Ip)  bf16 W1^T, VMEM-resident
        # b1_ref: (1, Ip)   f32
        # w2_ref: (Ip, Hp)  bf16 W2^T, VMEM-resident
        # b2_ref: (1, Hp)   f32
        # o_ref:  (tm, Hp)  bf16 (default) or f32
        x = x_ref[...].astype(jnp.bfloat16)

        # dense_1: bf16 x bf16 -> f32 accumulate, f32 bias.
        h = jnp.dot(x, w1_ref[...], preferred_element_type=jnp.float32) + b1_ref[...]

        # NewGELUActivation (tanh approximation).
        if gelu_in_bf16:                      # v6e / v7x: bf16 VPU+EUP path
            h = h.astype(jnp.bfloat16)
        h = 0.5 * h * (1.0 + jnp.tanh(_SQRT_2_OVER_PI * (h + 0.044715 * (h * h * h))))
        h = h.astype(jnp.bfloat16)

        # dense_2.
        y = jnp.dot(h, w2_ref[...], preferred_element_type=jnp.float32) + b2_ref[...]

        # dropout: identity at inference.
        o_ref[...] = y.astype(o_ref.dtype)

    return kernel


# ----------------------------------------------------------------------------
# One-time weight preparation (cache the result at model init).
# ----------------------------------------------------------------------------
def prepare_mlp_params(w1, b1, w2, b2):
    """w1: (I, H), b1: (I,), w2: (H, I), b2: (H,) as in nn.Linear.

    Transposes, pads feature dims to multiples of 128 (only if needed) and
    casts the weights to bf16.  Do this once; pass the result to mlp_pallas."""
    I, H = w1.shape
    Hp, Ip = _round_up(H, 128), _round_up(I, 128)

    w1_t = w1.T.astype(jnp.bfloat16)                       # (H, I)
    w2_t = w2.T.astype(jnp.bfloat16)                       # (I, H)
    b1_p = b1.reshape(1, I).astype(jnp.float32)
    b2_p = b2.reshape(1, H).astype(jnp.float32)

    if (Hp, Ip) != (H, I):                                 # real ViT sizes skip this
        w1_t = jnp.zeros((Hp, Ip), jnp.bfloat16).at[:H, :I].set(w1_t)
        w2_t = jnp.zeros((Ip, Hp), jnp.bfloat16).at[:I, :H].set(w2_t)
        b1_p = jnp.zeros((1, Ip), jnp.float32).at[:, :I].set(b1_p)
        b2_p = jnp.zeros((1, Hp), jnp.float32).at[:, :H].set(b2_p)

    return dict(w1_t=w1_t, b1=b1_p, w2_t=w2_t, b2=b2_p, H=H, I=I, Hp=Hp, Ip=Ip)


# ----------------------------------------------------------------------------
# pallas_call builder + public wrapper.
# ----------------------------------------------------------------------------
def _call_mlp(x2d, params, tm, out_dtype, gelu_in_bf16, dim_sem, single_buffer_weights):
    Tp, Hp = x2d.shape
    Ip = params["Ip"]
    grid = (Tp // tm,)

    # Constant index_map => weights are fetched once and stay resident; request
    # a single buffer for them so they don't get double-buffered.
    wkw = {"pipeline_mode": pl.Buffered(1)} if single_buffer_weights else {}
    in_specs = [
        pl.BlockSpec((tm, Hp), lambda i: (i, 0)),           # x tile (f32)
        pl.BlockSpec((Hp, Ip), lambda i: (0, 0), **wkw),    # W1^T (bf16, resident)
        pl.BlockSpec((1, Ip), lambda i: (0, 0), **wkw),     # b1   (f32)
        pl.BlockSpec((Ip, Hp), lambda i: (0, 0), **wkw),    # W2^T (bf16, resident)
        pl.BlockSpec((1, Hp), lambda i: (0, 0), **wkw),     # b2   (f32)
    ]

    out_bytes = jnp.dtype(out_dtype).itemsize
    cost = pl.CostEstimate(
        flops=4 * Tp * Hp * Ip,                    # two matmuls
        transcendentals=Tp * Ip,                   # tanh
        bytes_accessed=(Tp * Hp * 4                # x (f32)
                        + Tp * Hp * out_bytes      # out
                        + 2 * Hp * Ip * 2          # W1^T + W2^T (bf16)
                        + (Ip + Hp) * 4),          # biases (f32)
    )

    return pl.pallas_call(
        _make_mlp_kernel(gelu_in_bf16),
        out_shape=jax.ShapeDtypeStruct((Tp, Hp), out_dtype),
        grid_spec=pl.GridSpec(
            grid=grid,
            in_specs=in_specs,
            out_specs=pl.BlockSpec((tm, Hp), lambda i: (i, 0)),
        ),
        compiler_params=pltpu.CompilerParams(
            dimension_semantics=dim_sem,
            vmem_limit_bytes=_vmem_limit_bytes(),
        ),
        cost_estimate=cost,
    )(x2d, params["w1_t"], params["b1"], params["w2_t"], params["b2"])


def mlp_pallas(x, params, *, tm=None, out_dtype=jnp.bfloat16, gelu_in_bf16=None):
    """x: (B, S, H) f32; params: output of prepare_mlp_params.

    Returns (B, S, H) in out_dtype (bf16 by default for cheaper writeback;
    pass jnp.float32 to match the PyTorch module exactly)."""
    B, S, H = x.shape
    assert H == params["H"], "hidden size mismatch with prepared params"
    Hp = params["Hp"]
    T = B * S

    if gelu_in_bf16 is None:
        gelu_in_bf16 = default_gelu_in_bf16()

    # Token tile: big enough to amortize the ~0.35us/step overhead, multiple of
    # 16 (bf16 sublane packing), never larger than the rounded-up token count.
    if tm is None:
        tm = 512 if T >= 1024 else 256
    tm = _round_up(max(tm, 16), 16)
    tm = min(tm, _round_up(T, 16))
    Tp = _round_up(T, tm)

    # Single merged pad (tokens + hidden) only when actually required.
    x2d = x.reshape(T, H)
    if (Tp, Hp) != (T, H):
        x2d = jnp.zeros((Tp, Hp), x.dtype).at[:T, :H].set(x2d)

    n_blocks = Tp // tm
    # v7x has 2 TensorCores/chip: explicitly core-shard the token axis there.
    preferred_sem = ((pltpu.CORE_PARALLEL,)
                     if (_is_v7x() and n_blocks % 2 == 0) else ("parallel",))

    try:
        out2d = _call_mlp(x2d, params, tm, out_dtype, gelu_in_bf16,
                          preferred_sem, single_buffer_weights=True)
    except Exception:
        # Conservative fallback if this build rejects Buffered(1)/CORE_PARALLEL.
        out2d = _call_mlp(x2d, params, tm, out_dtype, gelu_in_bf16,
                          ("parallel",), single_buffer_weights=False)

    if (Tp, Hp) != (T, H):
        out2d = out2d[:T, :H]
    return out2d.reshape(B, S, H)


# ----------------------------------------------------------------------------
# References.
# ----------------------------------------------------------------------------
def mlp_reference_f32(x, w1, b1, w2, b2):
    """Pure f32 reference (original PyTorch module semantics)."""
    h = jnp.einsum("bsh,ih->bsi", x, w1) + b1
    h = 0.5 * h * (1.0 + jnp.tanh(_SQRT_2_OVER_PI * (h + 0.044715 * h ** 3)))
    return jnp.einsum("bsi,hi->bsh", h, w2) + b2


def mlp_reference_quantized(x, w1, b1, w2, b2, *, gelu_in_bf16, out_dtype):
    """Reference mirroring the kernel's bf16 operand / GELU / output path."""
    xb, w1b, w2b = (a.astype(jnp.bfloat16) for a in (x, w1, w2))
    h = jnp.einsum("bsh,ih->bsi", xb, w1b, preferred_element_type=jnp.float32) + b1
    if gelu_in_bf16:
        h = h.astype(jnp.bfloat16)
    h = 0.5 * h * (1.0 + jnp.tanh(_SQRT_2_OVER_PI * (h + 0.044715 * h * h * h)))
    h = h.astype(jnp.bfloat16)
    y = jnp.einsum("bsi,hi->bsh", h, w2b, preferred_element_type=jnp.float32) + b2
    return y.astype(out_dtype)


# ----------------------------------------------------------------------------
# Demo / self-test.
# ----------------------------------------------------------------------------
if __name__ == "__main__":
    # config: hidden_size=32, intermediate_size=128, hidden_dropout_prob=0.0 (eval)
    H, I = 32, 128

    key = jax.random.PRNGKey(0)
    kx, k1, k2, k3, k4, kx2 = jax.random.split(key, 6)

    # Deterministic Linear-style init (uniform in +-1/sqrt(fan_in)).
    w1 = jax.random.uniform(k1, (I, H), minval=-1.0, maxval=1.0) / math.sqrt(H)
    b1 = jax.random.uniform(k2, (I,), minval=-1.0, maxval=1.0) / math.sqrt(H)
    w2 = jax.random.uniform(k3, (H, I), minval=-1.0, maxval=1.0) / math.sqrt(I)
    b2 = jax.random.uniform(k4, (H,), minval=-1.0, maxval=1.0) / math.sqrt(I)

    # One-time weight prep (cached; zero per-call HBM passes over the weights).
    params = prepare_mlp_params(w1, b1, w2, b2)
    gb = default_gelu_in_bf16()

    # Case 1: B=2, S=8, default bf16 output (recommended inference path).
    x = jax.random.normal(kx, (2, 8, H), dtype=jnp.float32)
    out = jax.block_until_ready(mlp_pallas(x, params))
    assert out.shape == (2, 8, H) and out.dtype == jnp.bfloat16
    ref_q = mlp_reference_quantized(x, w1, b1, w2, b2,
                                    gelu_in_bf16=gb, out_dtype=jnp.bfloat16)
    ref_f = mlp_reference_f32(x, w1, b1, w2, b2)
    assert jnp.allclose(out.astype(jnp.float32), ref_q.astype(jnp.float32),
                        atol=1.5e-2, rtol=1.5e-2), "mismatch vs quantized reference"
    assert jnp.allclose(out.astype(jnp.float32), ref_f,
                        atol=6e-2, rtol=6e-2), "mismatch vs f32 reference"

    # Case 2: B=3, S=5 (T=15, exercises merged token/hidden padding) with f32
    # output to match the PyTorch module dtype exactly.
    x2 = jax.random.normal(kx2, (3, 5, H), dtype=jnp.float32)
    out2 = jax.block_until_ready(mlp_pallas(x2, params, out_dtype=jnp.float32))
    assert out2.shape == (3, 5, H) and out2.dtype == jnp.float32
    ref2_q = mlp_reference_quantized(x2, w1, b1, w2, b2,
                                     gelu_in_bf16=gb, out_dtype=jnp.float32)
    assert jnp.allclose(out2, ref2_q, atol=1e-2, rtol=1e-2), \
        "mismatch vs quantized reference (padded T)"
    assert jnp.allclose(out2, mlp_reference_f32(x2, w1, b1, w2, b2),
                        atol=6e-2, rtol=6e-2), "mismatch vs f32 reference (padded T)"

    print("KERNEL_OK")
</pallas_src>

<mosaic_0001>
module attributes {stable_mosaic.version = 11 : i64} {
  func.func @kernel(%arg0: i32, %arg1: memref<16x128xf32, #tpu.memory_space<vmem>>, %arg2: memref<128x128xbf16, #tpu.memory_space<vmem>>, %arg3: memref<1x128xf32, #tpu.memory_space<vmem>>, %arg4: memref<128x128xbf16, #tpu.memory_space<vmem>>, %arg5: memref<1x128xf32, #tpu.memory_space<vmem>>, %arg6: memref<16x128xbf16, #tpu.memory_space<vmem>>) attributes {dimension_semantics = [#tpu.dimension_semantics<parallel>], iteration_bounds = array<i64: 1>, scalar_prefetch = 0 : i64, scratch_operands = 0 : i64, tpu.core_type = #tpu.core_type<tc>, window_params = [{transform_indices = @transform_0, window_bounds = array<i64: 16, 128>}, {pipeline_mode = #tpu.pipeline_mode<synchronous>, transform_indices = @transform_1, window_bounds = array<i64: 128, 128>}, {pipeline_mode = #tpu.pipeline_mode<synchronous>, transform_indices = @transform_2, window_bounds = array<i64: 1, 128>}, {pipeline_mode = #tpu.pipeline_mode<synchronous>, transform_indices = @transform_3, window_bounds = array<i64: 128, 128>}, {pipeline_mode = #tpu.pipeline_mode<synchronous>, transform_indices = @transform_4, window_bounds = array<i64: 1, 128>}, {transform_indices = @transform_5, window_bounds = array<i64: 16, 128>}]} {
    %c0 = arith.constant 0 : index
    %c0_0 = arith.constant 0 : index
    %0 = vector.load %arg1[%c0, %c0_0] : memref<16x128xf32, #tpu.memory_space<vmem>>, vector<16x128xf32>
    %1 = arith.truncf %0 : vector<16x128xf32> to vector<16x128xbf16>
    %c0_1 = arith.constant 0 : index
    %c0_2 = arith.constant 0 : index
    %2 = vector.load %arg2[%c0_1, %c0_2] : memref<128x128xbf16, #tpu.memory_space<vmem>>, vector<128x128xbf16>
    %cst = arith.constant dense<0.000000e+00> : vector<16x128xf32>
    %3 = tpu.matmul %1, %2, %cst {dimension_numbers = #tpu.dot_dimension_numbers<[1], [0], [0], [1], [0, 0, 1, 1], [], []>} : vector<16x128xbf16>, vector<128x128xbf16>, vector<16x128xf32> -> vector<16x128xf32>
    %c0_3 = arith.constant 0 : index
    %c0_4 = arith.constant 0 : index
    %4 = vector.load %arg3[%c0_3, %c0_4] : memref<1x128xf32, #tpu.memory_space<vmem>>, vector<1x128xf32>
    %5 = vector.broadcast %4 : vector<1x128xf32> to vector<16x128xf32>
    %6 = arith.addf %3, %5 : vector<16x128xf32>
    %cst_5 = arith.constant 5.000000e-01 : f32
    %7 = vector.broadcast %cst_5 : f32 to vector<16x128xf32>
    %8 = arith.mulf %7, %6 : vector<16x128xf32>
    %9 = arith.mulf %6, %6 : vector<16x128xf32>
    %10 = arith.mulf %9, %6 : vector<16x128xf32>
    %cst_6 = arith.constant 4.471500e-02 : f32
    %11 = vector.broadcast %cst_6 : f32 to vector<16x128xf32>
    %12 = arith.mulf %11, %10 : vector<16x128xf32>
    %13 = arith.addf %6, %12 : vector<16x128xf32>
    %cst_7 = arith.constant 0.797884583 : f32
    %14 = vector.broadcast %cst_7 : f32 to vector<16x128xf32>
    %15 = arith.mulf %14, %13 : vector<16x128xf32>
    %16 = math.tanh %15 : vector<16x128xf32>
    %cst_8 = arith.constant 1.000000e+00 : f32
    %17 = vector.broadcast %cst_8 : f32 to vector<16x128xf32>
    %18 = arith.addf %17, %16 : vector<16x128xf32>
    %19 = arith.mulf %8, %18 : vector<16x128xf32>
    %20 = arith.truncf %19 : vector<16x128xf32> to vector<16x128xbf16>
    %c0_9 = arith.constant 0 : index
    %c0_10 = arith.constant 0 : index
    %21 = vector.load %arg4[%c0_9, %c0_10] : memref<128x128xbf16, #tpu.memory_space<vmem>>, vector<128x128xbf16>
    %cst_11 = arith.constant dense<0.000000e+00> : vector<16x128xf32>
    %22 = tpu.matmul %20, %21, %cst_11 {dimension_numbers = #tpu.dot_dimension_numbers<[1], [0], [0], [1], [0, 0, 1, 1], [], []>} : vector<16x128xbf16>, vector<128x128xbf16>, vector<16x128xf32> -> vector<16x128xf32>
    %c0_12 = arith.constant 0 : index
    %c0_13 = arith.constant 0 : index
    %23 = vector.load %arg5[%c0_12, %c0_13] : memref<1x128xf32, #tpu.memory_space<vmem>>, vector<1x128xf32>
    %24 = vector.broadcast %23 : vector<1x128xf32> to vector<16x128xf32>
    %25 = arith.addf %22, %24 : vector<16x128xf32>
    %26 = arith.truncf %25 : vector<16x128xf32> to vector<16x128xbf16>
    %c0_14 = arith.constant 0 : index
    %c0_15 = arith.constant 0 : index
    %27 = vector.load %arg6[%c0_14, %c0_15] : memref<16x128xbf16, #tpu.memory_space<vmem>>, vector<16x128xbf16>
    tpu.vector_store %arg6[%c0_14, %c0_15], %26 {strides = array<i32>} : memref<16x128xbf16, #tpu.memory_space<vmem>>, vector<16x128xbf16>,
    return
  }
  func.func @transform_0(%arg0: i32) -> (i32, i32) {
    %c0_i32 = arith.constant 0 : i32
    %c0_i32_0 = arith.constant 0 : i32
    return %arg0, %c0_i32 : i32, i32
  }
  func.func @transform_1(%arg0: i32) -> (i32, i32) {
    %c0_i32 = arith.constant 0 : i32
    %c0_i32_0 = arith.constant 0 : i32
    %c0_i32_1 = arith.constant 0 : i32
    return %c0_i32, %c0_i32_0 : i32, i32
  }
  func.func @transform_2(%arg0: i32) -> (i32, i32) {
    %c0_i32 = arith.constant 0 : i32
    %c0_i32_0 = arith.constant 0 : i32
    %c0_i32_1 = arith.constant 0 : i32
    return %c0_i32, %c0_i32_0 : i32, i32
  }
  func.func @transform_3(%arg0: i32) -> (i32, i32) {
    %c0_i32 = arith.constant 0 : i32
    %c0_i32_0 = arith.constant 0 : i32
    %c0_i32_1 = arith.constant 0 : i32
    return %c0_i32, %c0_i32_0 : i32, i32
  }
  func.func @transform_4(%arg0: i32) -> (i32, i32) {
    %c0_i32 = arith.constant 0 : i32
    %c0_i32_0 = arith.constant 0 : i32
    %c0_i32_1 = arith.constant 0 : i32
    return %c0_i32, %c0_i32_0 : i32, i32
  }
  func.func @transform_5(%arg0: i32) -> (i32, i32) {
    %c0_i32 = arith.constant 0 : i32
    %c0_i32_0 = arith.constant 0 : i32
    return %arg0, %c0_i32 : i32, i32
  }
}

module attributes {stable_mosaic.version = 11 : i64} {
  func.func @kernel(%arg0: i32, %arg1: memref<16x128xf32, #tpu.memory_space<vmem>>, %arg2: memref<128x128xbf16, #tpu.memory_space<vmem>>, %arg3: memref<1x128xf32, #tpu.memory_space<vmem>>, %arg4: memref<128x128xbf16, #tpu.memory_space<vmem>>, %arg5: memref<1x128xf32, #tpu.memory_space<vmem>>, %arg6: memref<16x128xbf16, #tpu.memory_space<vmem>>) attributes {dimension_semantics = [#tpu.dimension_semantics<parallel>], iteration_bounds = array<i64: 1>, scalar_prefetch = 0 : i64, scratch_operands = 0 : i64, tpu.core_type = #tpu.core_type<tc>, window_params = [{transform_indices = @transform_0, window_bounds = array<i64: 16, 128>}, {pipeline_mode = #tpu.pipeline_mode<synchronous>, transform_indices = @transform_1, window_bounds = array<i64: 128, 128>}, {pipeline_mode = #tpu.pipeline_mode<synchronous>, transform_indices = @transform_2, window_bounds = array<i64: 1, 128>}, {pipeline_mode = #tpu.pipeline_mode<synchronous>, transform_indices = @transform_3, window_bounds = array<i64: 128, 128>}, {pipeline_mode = #tpu.pipeline_mode<synchronous>, transform_indices = @transform_4, window_bounds = array<i64: 1, 128>}, {transform_indices = @transform_5, window_bounds = array<i64: 16, 128>}]} {
    %c0 = arith.constant 0 : index
    %c0_0 = arith.constant 0 : index
    %0 = vector.load %arg1[%c0, %c0_0] : memref<16x128xf32, #tpu.memory_space<vmem>>, vector<16x128xf32>
    %1 = arith.truncf %0 : vector<16x128xf32> to vector<16x128xbf16>
    %c0_1 = arith.constant 0 : index
    %c0_2 = arith.constant 0 : index
    %2 = vector.load %arg2[%c0_1, %c0_2] : memref<128x128xbf16, #tpu.memory_space<vmem>>, vector<128x128xbf16>
    %cst = arith.constant dense<0.000000e+00> : vector<16x128xf32>
    %3 = tpu.matmul %1, %2, %cst {dimension_numbers = #tpu.dot_dimension_numbers<[1], [0], [0], [1], [0, 0, 1, 1], [], []>} : vector<16x128xbf16>, vector<128x128xbf16>, vector<16x128xf32> -> vector<16x128xf32>
    %c0_3 = arith.constant 0 : index
    %c0_4 = arith.constant 0 : index
    %4 = vector.load %arg3[%c0_3, %c0_4] : memref<1x128xf32, #tpu.memory_space<vmem>>, vector<1x128xf32>
    %5 = vector.broadcast %4 : vector<1x128xf32> to vector<16x128xf32>
    %6 = arith.addf %3, %5 : vector<16x128xf32>
    %cst_5 = arith.constant 5.000000e-01 : f32
    %7 = vector.broadcast %cst_5 : f32 to vector<16x128xf32>
    %8 = arith.mulf %7, %6 : vector<16x128xf32>
    %9 = arith.mulf %6, %6 : vector<16x128xf32>
    %10 = arith.mulf %9, %6 : vector<16x128xf32>
    %cst_6 = arith.constant 4.471500e-02 : f32
    %11 = vector.broadcast %cst_6 : f32 to vector<16x128xf32>
    %12 = arith.mulf %11, %10 : vector<16x128xf32>
    %13 = arith.addf %6, %12 : vector<16x128xf32>
    %cst_7 = arith.constant 0.797884583 : f32
    %14 = vector.broadcast %cst_7 : f32 to vector<16x128xf32>
    %15 = arith.mulf %14, %13 : vector<16x128xf32>
    %16 = math.tanh %15 : vector<16x128xf32>
    %cst_8 = arith.constant 1.000000e+00 : f32
    %17 = vector.broadcast %cst_8 : f32 to vector<16x128xf32>
    %18 = arith.addf %17, %16 : vector<16x128xf32>
    %19 = arith.mulf %8, %18 : vector<16x128xf32>
    %20 = arith.truncf %19 : vector<16x128xf32> to vector<16x128xbf16>
    %c0_9 = arith.constant 0 : index
    %c0_10 = arith.constant 0 : index
    %21 = vector.load %arg4[%c0_9, %c0_10] : memref<128x128xbf16, #tpu.memory_space<vmem>>, vector<128x128xbf16>
    %cst_11 = arith.constant dense<0.000000e+00> : vector<16x128xf32>
    %22 = tpu.matmul %20, %21, %cst_11 {dimension_numbers = #tpu.dot_dimension_numbers<[1], [0], [0], [1], [0, 0, 1, 1], [], []>} : vector<16x128xbf16>, vector<128x128xbf16>, vector<16x128xf32> -> vector<16x128xf32>
    %c0_12 = arith.constant 0 : index
    %c0_13 = arith.constant 0 : index
    %23 = vector.load %arg5[%c0_12, %c0_13] : memref<1x128xf32, #tpu.memory_space<vmem>>, vector<1x128xf32>
    %24 = vector.broadcast %23 : vector<1x128xf32> to vector<16x128xf32>
    %25 = arith.addf %22, %24 : vector<16x128xf32>
    %26 = arith.truncf %25 : vector<16x128xf32> to vector<16x128xbf16>
    %c0_14 = arith.constant 0 : index
    %c0_15 = arith.constant 0 : index
    %27 = vector.load %arg6[%c0_14, %c0_15] : memref<16x128xbf16, #tpu.memory_space<vmem>>, vector<16x128xbf16>
    tpu.vector_store %arg6[%c0_14, %c0_15], %26 {strides = array<i32>} : memref<16x128xbf16, #tpu.memory_space<vmem>>, vector<16x128xbf16>,
    return
  }
  func.func @transform_0(%arg0: i32) -> (i32, i32) {
    %c0_i32 = arith.constant 0 : i32
    %c0_i32_0 = arith.constant 0 : i32
    return %arg0, %c0_i32 : i32, i32
  }
  func.func @transform_1(%arg0: i32) -> (i32, i32) {
    %c0_i32 = arith.constant 0 : i32
    %c0_i32_0 = arith.constant 0 : i32
    %c0_i32_1 = arith.constant 0 : i32
    return %c0_i32, %c0_i32_0 : i32, i32
  }
  func.func @transform_2(%arg0: i32) -> (i32, i32) {
    %c0_i32 = arith.constant 0 : i32
    %c0_i32_0 = arith.constant 0 : i32
    %c0_i32_1 = arith.constant 0 : i32
    return %c0_i32, %c0_i32_0 : i32, i32
  }
  func.func @transform_3(%arg0: i32) -> (i32, i32) {
    %c0_i32 = arith.constant 0 : i32
    %c0_i32_0 = arith.constant 0 : i32
    %c0_i32_1 = arith.constant 0 : i32
    return %c0_i32, %c0_i32_0 : i32, i32
  }
  func.func @transform_4(%arg0: i32) -> (i32, i32) {
    %c0_i32 = arith.constant 0 : i32
    %c0_i32_0 = arith.constant 0 : i32
    %c0_i32_1 = arith.constant 0 : i32
    return %c0_i32, %c0_i32_0 : i32, i32
  }
  func.func @transform_5(%arg0: i32) -> (i32, i32) {
    %c0_i32 = arith.constant 0 : i32
    %c0_i32_0 = arith.constant 0 : i32
    return %arg0, %c0_i32 : i32, i32
  }
}

</mosaic_0001>

<bundles_post_ra>
// kernel: tpu_custom_call.1
= control target key start
LH: loop header
LB: loop body
LE: loop exit
PB: predicated region body
PF: predicated region fallthrough
CT: control target
= control target key end

     0   :  { %10 = vsyncpa [#allocation3], 0  ;;  %s741_s0 = inlined_call_operand.hbm [shape: f32[16,128], index: 0, kind: input, shape index: {}]   ;;  %s742_s1 = inlined_call_operand.hbm [shape: bf16[128,128], index: 1, kind: input, shape index: {}]   ;;  %s743_s2 = inlined_call_operand.hbm [shape: f32[1,128], index: 2, kind: input, shape index: {}]   ;;  %s744_s3 = inlined_call_operand.hbm [shape: bf16[128,128], index: 3, kind: input, shape index: {}]   ;;  %s745_s4 = inlined_call_operand.hbm [shape: f32[1,128], index: 4, kind: input, shape index: {}]   ;;  %s746_s5 = inlined_call_operand.hbm [shape: bf16[16,128], index: 5, kind: output, shape index: {}]  }
   0x1   :  { %11 = vsyncpa [#allocation6], 0 }
   0x2   :  { %12 = vsyncpa [#allocation9], 0 }
   0x3   :  { %13 = vsyncpa [#allocation4], 0  ;;  %s618_s18 = smov [#allocation5]   ;;  %s478_s22 = scalar_lea.hbm %s742_s1, 1024 }
   0x4   :  { %s31_s19 = sshll.u32 %s618_s18, 4  ;;  %p479_p0 = scmp.ne.s32.totalorder %s742_s1, %s478_s22  ;;  %s32_s19 = int_to_ptr.vmem [resolvable:$true] %s31_s19 }
   0x5   :  { %p482_p1 = scmp.lt.u32.totalorder %s478_s22, %s742_s1 }
   0x7   :  { %p484_p2 = pnand %p482_p1, %p479_p0 }
   0x9   :  { %487 = shalt.err (!%p484_p2)
}
   0xa   :  { %s488_s27 = scalar_lea.vmem %s32_s19, 1024  ;;  %p493_p4 = scmp.lt.s32.totalorder %s32_s19, %s32_s19 }
   0xb   :  { %p489_p3 = scmp.ne.s32.totalorder %s32_s19, %s488_s27  ;;  %p494_p5 = scmp.lt.s32.totalorder %s488_s27, %s488_s27 }
   0xd   :  { %p495_p6 = por %p494_p5, %p493_p4 }
   0xf   :  { %p496_p7 = pnand %p495_p6, %p489_p3 }
  0x11   :  { %499 = shalt.err (!%p496_p7)
}
  0x12   :  { %s619_s28 = smov 64   ;;  %s620_s29 = smov 4  }
  0x13   :  { %37 = dma.hbm_to_vmem [thread:$0]  %s742_s1, 1024, %s32_s19, [#allocation6], %s619_s28, %s619_s28, %s620_s29  }
  0x14   :  { %s621_s7 = smov [#allocation8]   ;;  %s622_s9 = smov [#allocation2]  }
  0x15   :  { %s53_s8 = sshll.u32 %s621_s7, 4  ;;  %s19_s10 = sshll.u32 %s622_s9, 4  ;;  %s54_s8 = int_to_ptr.vmem [resolvable:$true] %s53_s8  ;;  %s20_s10 = int_to_ptr.vmem [resolvable:$true] %s19_s10 }
  0x16   :  { %s500_s13 = scalar_lea.hbm %s744_s3, 1024 }
  0x17   :  { %p501_p8 = scmp.ne.s32.totalorder %s744_s3, %s500_s13  ;;  %p504_p9 = scmp.lt.u32.totalorder %s500_s13, %s744_s3 }
  0x19   :  { %p506_p10 = pnand %p504_p9, %p501_p8 }
  0x1b   :  { %509 = shalt.err (!%p506_p10)
}
  0x1c   :  { %s510_s1 = scalar_lea.vmem %s54_s8, 1024  ;;  %p515_p12 = scmp.lt.s32.totalorder %s54_s8, %s54_s8 }
  0x1d   :  { %p511_p11 = scmp.ne.s32.totalorder %s54_s8, %s510_s1  ;;  %p516_p13 = scmp.lt.s32.totalorder %s510_s1, %s510_s1 }
  0x1f   :  { %p517_p0 = por %p516_p13, %p515_p12 }
  0x21   :  { %p518_p1 = pnand %p517_p0, %p511_p11 }
  0x23   :  { %521 = shalt.err (!%p518_p1)
}
  0x24   :  { %59 = dma.hbm_to_vmem [thread:$0]  %s744_s3, 1024, %s54_s8, [#allocation9], %s619_s28, %s619_s28, %s620_s29  }
  0x25   :  { %s522_s22 = scalar_lea.hbm %s741_s0, 256 }
  0x26   :  { %p523_p2 = scmp.ne.s32.totalorder %s741_s0, %s522_s22  ;;  %p526_p3 = scmp.lt.u32.totalorder %s522_s22, %s741_s0 }
  0x28   :  { %p528_p4 = pnand %p526_p3, %p523_p2 }
  0x2a   :  { %531 = shalt.err (!%p528_p4)
}
  0x2b   :  { %s532_s27 = scalar_lea.vmem %s20_s10, 256  ;;  %p537_p6 = scmp.lt.s32.totalorder %s20_s10, %s20_s10 }
  0x2c   :  { %p533_p5 = scmp.ne.s32.totalorder %s20_s10, %s532_s27  ;;  %p538_p7 = scmp.lt.s32.totalorder %s532_s27, %s532_s27 }
  0x2e   :  { %p539_p8 = por %p538_p7, %p537_p6 }
  0x30   :  { %p540_p9 = pnand %p539_p8, %p533_p5 }
  0x32   :  { %543 = shalt.err (!%p540_p9)
}
  0x33   :  { %s623_s3 = smov 128   ;;  %s624_s30 = smov 8  }
  0x34   :  { %25 = dma.hbm_to_vmem [thread:$0]  %s741_s0, 256, %s20_s10, [#allocation3], %s623_s3, %s623_s3, %s624_s30  }
  0x35   :  { %s625_s8 = smov [#allocation7]   ;;  %s626_s11 = smov [#allocation10]  }
  0x36   :  { %s44_s9 = sshll.u32 %s625_s8, 4  ;;  %s66_s12 = sshll.u32 %s626_s11, 4  ;;  %s45_s9 = int_to_ptr.vmem [resolvable:$true] %s44_s9  ;;  %s67_s12 = int_to_ptr.vmem [resolvable:$true] %s66_s12 }
  0x37   :  { %s544_s15 = scalar_lea.hbm %s743_s2, 16 }
  0x38   :  { %p545_p10 = scmp.ne.s32.totalorder %s743_s2, %s544_s15  ;;  %p548_p11 = scmp.lt.u32.totalorder %s544_s15, %s743_s2 }
  0x3a   :  { %p550_p12 = pnand %p548_p11, %p545_p10 }
  0x3c   :  { %553 = shalt.err (!%p550_p12)
}
  0x3d   :  { %s554_s0 = scalar_lea.vmem %s45_s9, 16  ;;  %s558_s10 = scalar_lea.vmem %s45_s9, 32 }
  0x3e   :  { %p555_p13 = scmp.ne.s32.totalorder %s45_s9, %s554_s0  ;;  %p559_p0 = scmp.lt.s32.totalorder %s45_s9, %s45_s9 }
  0x3f   :  { %p560_p1 = scmp.lt.s32.totalorder %s558_s10, %s554_s0 }
  0x41   :  { %p561_p2 = por %p560_p1, %p559_p0 }
  0x43   :  { %p562_p3 = pnand %p561_p2, %p555_p13 }
  0x45   :  { %565 = shalt.err (!%p562_p3)
}
  0x46   :  { %47 = dma.hbm_to_vmem [thread:$0]  %s743_s2, 16, %s45_s9, [#allocation6]  }
  0x47   :  { %s566_s23 = scalar_lea.hbm %s745_s4, 16 }
  0x48   :  { %p567_p4 = scmp.ne.s32.totalorder %s745_s4, %s566_s23  ;;  %p570_p5 = scmp.lt.u32.totalorder %s566_s23, %s745_s4 }
  0x4a   :  { %p572_p6 = pnand %p570_p5, %p567_p4 }
  0x4c   :  { %575 = shalt.err (!%p572_p6)
}
  0x4d   :  { %s576_s3 = scalar_lea.vmem %s67_s12, 16  ;;  %s580_s30 = scalar_lea.vmem %s67_s12, 32 }
  0x4e   :  { %p577_p7 = scmp.ne.s32.totalorder %s67_s12, %s576_s3  ;;  %p581_p8 = scmp.lt.s32.totalorder %s67_s12, %s67_s12 }
  0x4f   :  { %p582_p9 = scmp.lt.s32.totalorder %s580_s30, %s576_s3 }
  0x51   :  { %p583_p10 = por %p582_p9, %p581_p8 }
  0x53   :  { %p584_p11 = pnand %p583_p10, %p577_p7 }
  0x55   :  { %587 = shalt.err (!%p584_p11)
}
  0x56   :  { %69 = dma.hbm_to_vmem [thread:$0]  %s745_s4, 16, %s67_s12, [#allocation9]  }
  0x57   :  { %610 = dma.done.wait [#allocation3], 256  }
  0x58   :  { %611 = vsyncadd [#allocation3], 4294967040 }
  0x59   :  { %612 = dma.done.wait [#allocation6], 1040  }
  0x5a   :  { %613 = vsyncadd [#allocation6], 4294966256 }
  0x5b   :  { %614 = dma.done.wait [#allocation9], 1040  }
  0x5c   :  { %615 = vsyncadd [#allocation9], 4294966256  ;;  %v627_v0 = vmov 0.0   ;;  %vm628_vm0 = vmmov 0   ;;  %v458_v1 = vld [vmem:[#allocation5] sm:$0xff]   ;;  %v459_v2 = vld [vmem:[#allocation5 + $0x8] sm:$0xff]  }
  0x5d   :  { %406 = vmatprep.subr.bf16.mxu0 %v627_v0  ;;  %422 = vmatprep.mubr.msk.bf16.mxu0 %vm628_vm0, %v627_v0  ;;  %v460_v3 = vld [vmem:[#allocation5 + $0x10] sm:$0xff]   ;;  %v461_v4 = vld [vmem:[#allocation5 + $0x18] sm:$0xff]   ;;  %v462_v5 = vld [vmem:[#allocation5 + $0x20] sm:$0xff]   ;;  %s629_s4 = smov [#allocation11]  }
  0x5e   :  { %426 = vmatprep.subr.bf16.mxu1 %v627_v0  ;;  %442 = vmatprep.mubr.msk.bf16.mxu1 %vm628_vm0, %v627_v0  ;;  %v463_v6 = vld [vmem:[#allocation5 + $0x28] sm:$0xff]   ;;  %v464_v7 = vld [vmem:[#allocation5 + $0x30] sm:$0xff]   ;;  %v465_v8 = vld [vmem:[#allocation5 + $0x38] sm:$0xff]   ;;  %s347_s7 = sshll.u32 %s629_s4, 4  ;;  %s348_s7 = int_to_ptr.vmem [resolvable:$true] %s347_s7 }
  0x5f   :  { %407 = vmatpush3.bf16.msra.mxu0 %v458_v1  ;;  %v86_v9 = vld [vmem:[#allocation2] sm:$0xff]  ;;  %v87_v10 = vld [vmem:[#allocation2 + $0x8] sm:$0xff]  ;;  %v466_v12 = vld [vmem:[#allocation8] sm:$0xff]   ;;  %s588_s8 = scalar_lea.vmem %s348_s7, 128  ;;  %p593_p13 = scmp.lt.s32.totalorder %s348_s7, %s348_s7 }
  0x60   :  { %408 = vmatprep.subr.bf16.mxu0 %v627_v0  ;;  %v88_v11 = vpack.c.bf16 %v87_v10, %v86_v9  ;;  %427 = vmatpush3.bf16.msra.mxu1 %v466_v12  ;;  %v467_v13 = vld [vmem:[#allocation8 + $0x8] sm:$0xff]   ;;  %v468_v14 = vld [vmem:[#allocation8 + $0x10] sm:$0xff]   ;;  %v469_v15 = vld [vmem:[#allocation8 + $0x18] sm:$0xff]   ;;  %p589_p12 = scmp.ne.s32.totalorder %s348_s7, %s588_s8  ;;  %p594_p0 = scmp.lt.s32.totalorder %s588_s8, %s588_s8 }
  0x61   :  { %428 = vmatprep.subr.bf16.mxu1 %v627_v0  ;;  %v470_v16 = vld [vmem:[#allocation8 + $0x20] sm:$0xff]   ;;  %v471_v17 = vld [vmem:[#allocation8 + $0x28] sm:$0xff]   ;;  %v472_v18 = vld [vmem:[#allocation8 + $0x30] sm:$0xff]  }
  0x62   :  { %v473_v19 = vld [vmem:[#allocation8 + $0x38] sm:$0xff]   ;;  %v370_v46 = vld [vmem:[#allocation10] ss:$0 sm:$0xff]  ;;  %p595_p1 = por %p594_p0, %p593_p13 }
  0x63   :  { %409 = vmatpush3.bf16.msra.mxu0 %v459_v2  ;;  %v361_v20 = vld [vmem:[#allocation7] ss:$0 sm:$0xff] }
  0x64   :  { %410 = vmatprep.subr.bf16.mxu0 %v627_v0  ;;  %429 = vmatpush3.bf16.msra.mxu1 %v467_v13  ;;  %p596_p2 = pnand %p595_p1, %p589_p12 }
  0x65   :  { %430 = vmatprep.subr.bf16.mxu1 %v627_v0 }
  0x67   :  { %411 = vmatpush3.bf16.msra.mxu0 %v460_v3 }
  0x68   :  { %412 = vmatprep.subr.bf16.mxu0 %v627_v0  ;;  %431 = vmatpush3.bf16.msra.mxu1 %v468_v14 }
  0x69   :  { %432 = vmatprep.subr.bf16.mxu1 %v627_v0 }
  0x6b   :  { %413 = vmatpush3.bf16.msra.mxu0 %v461_v4 }
  0x6c   :  { %414 = vmatprep.subr.bf16.mxu0 %v627_v0  ;;  %433 = vmatpush3.bf16.msra.mxu1 %v469_v15 }
  0x6d   :  { %434 = vmatprep.subr.bf16.mxu1 %v627_v0 }
  0x6f   :  { %415 = vmatpush3.bf16.msra.mxu0 %v462_v5 }
  0x70   :  { %416 = vmatprep.subr.bf16.mxu0 %v627_v0  ;;  %435 = vmatpush3.bf16.msra.mxu1 %v470_v16 }
  0x71   :  { %436 = vmatprep.subr.bf16.mxu1 %v627_v0 }
  0x73   :  { %417 = vmatpush3.bf16.msra.mxu0 %v463_v6 }
  0x74   :  { %418 = vmatprep.subr.bf16.mxu0 %v627_v0  ;;  %437 = vmatpush3.bf16.msra.mxu1 %v471_v17 }
  0x75   :  { %438 = vmatprep.subr.bf16.mxu1 %v627_v0 }
  0x77   :  { %419 = vmatpush3.bf16.msra.mxu0 %v464_v7 }
  0x78   :  { %420 = vmatprep.subr.bf16.mxu0 %v627_v0  ;;  %439 = vmatpush3.bf16.msra.mxu1 %v472_v18 }
  0x79   :  { %440 = vmatprep.subr.bf16.mxu1 %v627_v0 }
  0x7b   :  { %421 = vmatpush3.bf16.msra.mxu0 %v465_v8 }
  0x7c   :  { %441 = vmatpush3.bf16.msra.mxu1 %v473_v19 }
  0x7e   :  { %423 = vmatmul.mubr.bf16.vlgmr.msra.gmra.mrb[0].mxu0 %v88_v11 }
 0x151   :  { %v194_v21 = vpop.f32.mrb[0].mxu0 }
 0x152   :  { %v195_v22 = vadd.f32 %v361_v20, %v194_v21  ;;  %v424_v23 = vpop.f32.mrb[1].mxu0 }
 0x153   :  { %v197_v24 = vpop.f32.mrb[2].mxu0 }
 0x154   :  { %v203_v25 = vmul.f32 %v195_v22, %v195_v22  ;;  %v198_v26 = vadd.f32 %v361_v20, %v197_v24  ;;  %v425_v27 = vpop.f32.mrb[3].mxu0  ;;  %v201_v40 = vmul.f32 0.5, %v195_v22 }
 0x156   :  { %v205_v28 = vmul.f32 %v203_v25, %v195_v22  ;;  %v204_v29 = vmul.f32 %v198_v26, %v198_v26  ;;  %v202_v41 = vmul.f32 0.5, %v198_v26 }
 0x158   :  { %v207_v30 = vmul.f32 0.044715, %v205_v28  ;;  %v206_v31 = vmul.f32 %v204_v29, %v198_v26 }
 0x15a   :  { %v209_v32 = vadd.f32 %v207_v30, %v195_v22  ;;  %v208_v33 = vmul.f32 0.044715, %v206_v31 }
 0x15c   :  { %v211_v34 = vmul.f32 0.7978846, %v209_v32  ;;  %v210_v35 = vadd.f32 %v208_v33, %v198_v26 }
 0x15e   :  { %474 = vtanh.f32 %v211_v34  ;;  %v212_v36 = vmul.f32 0.7978846, %v210_v35 }
 0x160   :  { %476 = vtanh.f32 %v212_v36 }
 0x168   :  { %v475_v37 = vpop.eup %474 }
 0x169   :  { %v215_v38 = vadd.f32 1.0, %v475_v37 }
 0x16a   :  { %v477_v39 = vpop.eup %476 }
 0x16b   :  { %v216_v42 = vadd.f32 1.0, %v477_v39  ;;  %v217_v43 = vmul.f32 %v215_v38, %v201_v40 }
 0x16d   :  { %v218_v44 = vmul.f32 %v216_v42, %v202_v41 }
 0x16f   :  { %v219_v45 = vpack.c.bf16 %v218_v44, %v217_v43 }
 0x171   :  { %443 = vmatmul.mubr.bf16.vlgmr.msra.gmra.mrb[0].mxu1 %v219_v45 }
 0x244   :  { %v325_v47 = vpop.f32.mrb[0].mxu1 }
 0x245   :  { %v444_v48 = vpop.f32.mrb[1].mxu1  ;;  %v326_v50 = vadd.f32 %v370_v46, %v325_v47 }
 0x246   :  { %v328_v49 = vpop.f32.mrb[2].mxu1 }
 0x247   :  { %v329_v51 = vadd.f32 %v370_v46, %v328_v49  ;;  %v445_v52 = vpop.f32.mrb[3].mxu1 }
 0x249   :  { %v386_v53 = vpack.c.bf16 %v329_v51, %v326_v50 }
 0x24b   :  { %387 = vst [vmem:[#allocation11] sm:$0xff] %v386_v53  }
 0x24c   :  { %599 = shalt.err (!%p596_p2)
}
 0x24d   :  { %s600_s12 = scalar_lea.hbm %s746_s5, 128 }
 0x24e   :  { %p601_p3 = scmp.ne.s32.totalorder %s746_s5, %s600_s12  ;;  %p604_p4 = scmp.lt.u32.totalorder %s600_s12, %s746_s5 }
 0x250   :  { %p606_p5 = pnand %p604_p4, %p601_p3 }
 0x252   :  { %609 = shalt.err (!%p606_p5)
}
 0x253   :  { %353 = dma.vmem_to_hbm [thread:$0]  %s348_s7, 128, %s746_s5, [#allocation4], %s619_s28, %s619_s28, %s620_s29  }
 0x254   :  { %616 = dma.done.wait [#allocation4], 128  }
 0x255   :  { %617 = vsyncadd [#allocation4], 4294967168 }
 0x256   :  { %357 = vsyncpa [#allocation3], 1 }
 0x257   :  { %358 = vsyncpa [#allocation6], 1 }
 0x258   :  { %359 = vsyncpa [#allocation9], 1 }
 0x259   :  { %360 = vsyncpa [#allocation4], 1 }

// kernel: tpu_custom_call.1
= control target key start
LH: loop header
LB: loop body
LE: loop exit
PB: predicated region body
PF: predicated region fallthrough
CT: control target
= control target key end

     0   :  { %10 = vsyncpa [#allocation3], 0  ;;  %s741_s0 = inlined_call_operand.hbm [shape: f32[16,128], index: 0, kind: input, shape index: {}]   ;;  %s742_s1 = inlined_call_operand.hbm [shape: bf16[128,128], index: 1, kind: input, shape index: {}]   ;;  %s743_s2 = inlined_call_operand.hbm [shape: f32[1,128], index: 2, kind: input, shape index: {}]   ;;  %s744_s3 = inlined_call_operand.hbm [shape: bf16[128,128], index: 3, kind: input, shape index: {}]   ;;  %s745_s4 = inlined_call_operand.hbm [shape: f32[1,128], index: 4, kind: input, shape index: {}]   ;;  %s746_s5 = inlined_call_operand.hbm [shape: bf16[16,128], index: 5, kind: output, shape index: {}]  }
   0x1   :  { %11 = vsyncpa [#allocation6], 0 }
   0x2   :  { %12 = vsyncpa [#allocation9], 0 }
   0x3   :  { %13 = vsyncpa [#allocation4], 0  ;;  %s618_s18 = smov [#allocation5]   ;;  %s478_s22 = scalar_lea.hbm %s742_s1, 1024 }
   0x4   :  { %s31_s19 = sshll.u32 %s618_s18, 4  ;;  %p479_p0 = scmp.ne.s32.totalorder %s742_s1, %s478_s22  ;;  %s32_s19 = int_to_ptr.vmem [resolvable:$true] %s31_s19 }
   0x5   :  { %p482_p1 = scmp.lt.u32.totalorder %s478_s22, %s742_s1 }
   0x7   :  { %p484_p2 = pnand %p482_p1, %p479_p0 }
   0x9   :  { %487 = shalt.err (!%p484_p2)
}
   0xa   :  { %s488_s27 = scalar_lea.vmem %s32_s19, 1024  ;;  %p493_p4 = scmp.lt.s32.totalorder %s32_s19, %s32_s19 }
   0xb   :  { %p489_p3 = scmp.ne.s32.totalorder %s32_s19, %s488_s27  ;;  %p494_p5 = scmp.lt.s32.totalorder %s488_s27, %s488_s27 }
   0xd   :  { %p495_p6 = por %p494_p5, %p493_p4 }
   0xf   :  { %p496_p7 = pnand %p495_p6, %p489_p3 }
  0x11   :  { %499 = shalt.err (!%p496_p7)
}
  0x12   :  { %s619_s28 = smov 64   ;;  %s620_s29 = smov 4  }
  0x13   :  { %37 = dma.hbm_to_vmem [thread:$0]  %s742_s1, 1024, %s32_s19, [#allocation6], %s619_s28, %s619_s28, %s620_s29  }
  0x14   :  { %s621_s7 = smov [#allocation8]   ;;  %s622_s9 = smov [#allocation2]  }
  0x15   :  { %s53_s8 = sshll.u32 %s621_s7, 4  ;;  %s19_s10 = sshll.u32 %s622_s9, 4  ;;  %s54_s8 = int_to_ptr.vmem [resolvable:$true] %s53_s8  ;;  %s20_s10 = int_to_ptr.vmem [resolvable:$true] %s19_s10 }
  0x16   :  { %s500_s13 = scalar_lea.hbm %s744_s3, 1024 }
  0x17   :  { %p501_p8 = scmp.ne.s32.totalorder %s744_s3, %s500_s13  ;;  %p504_p9 = scmp.lt.u32.totalorder %s500_s13, %s744_s3 }
  0x19   :  { %p506_p10 = pnand %p504_p9, %p501_p8 }
  0x1b   :  { %509 = shalt.err (!%p506_p10)
}
  0x1c   :  { %s510_s1 = scalar_lea.vmem %s54_s8, 1024  ;;  %p515_p12 = scmp.lt.s32.totalorder %s54_s8, %s54_s8 }
  0x1d   :  { %p511_p11 = scmp.ne.s32.totalorder %s54_s8, %s510_s1  ;;  %p516_p13 = scmp.lt.s32.totalorder %s510_s1, %s510_s1 }
  0x1f   :  { %p517_p0 = por %p516_p13, %p515_p12 }
  0x21   :  { %p518_p1 = pnand %p517_p0, %p511_p11 }
  0x23   :  { %521 = shalt.err (!%p518_p1)
}
  0x24   :  { %59 = dma.hbm_to_vmem [thread:$0]  %s744_s3, 1024, %s54_s8, [#allocation9], %s619_s28, %s619_s28, %s620_s29  }
  0x25   :  { %s522_s22 = scalar_lea.hbm %s741_s0, 256 }
  0x26   :  { %p523_p2 = scmp.ne.s32.totalorder %s741_s0, %s522_s22  ;;  %p526_p3 = scmp.lt.u32.totalorder %s522_s22, %s741_s0 }
  0x28   :  { %p528_p4 = pnand %p526_p3, %p523_p2 }
  0x2a   :  { %531 = shalt.err (!%p528_p4)
}
  0x2b   :  { %s532_s27 = scalar_lea.vmem %s20_s10, 256  ;;  %p537_p6 = scmp.lt.s32.totalorder %s20_s10, %s20_s10 }
  0x2c   :  { %p533_p5 = scmp.ne.s32.totalorder %s20_s10, %s532_s27  ;;  %p538_p7 = scmp.lt.s32.totalorder %s532_s27, %s532_s27 }
  0x2e   :  { %p539_p8 = por %p538_p7, %p537_p6 }
  0x30   :  { %p540_p9 = pnand %p539_p8, %p533_p5 }
  0x32   :  { %543 = shalt.err (!%p540_p9)
}
  0x33   :  { %s623_s3 = smov 128   ;;  %s624_s30 = smov 8  }
  0x34   :  { %25 = dma.hbm_to_vmem [thread:$0]  %s741_s0, 256, %s20_s10, [#allocation3], %s623_s3, %s623_s3, %s624_s30  }
  0x35   :  { %s625_s8 = smov [#allocation7]   ;;  %s626_s11 = smov [#allocation10]  }
  0x36   :  { %s44_s9 = sshll.u32 %s625_s8, 4  ;;  %s66_s12 = sshll.u32 %s626_s11, 4  ;;  %s45_s9 = int_to_ptr.vmem [resolvable:$true] %s44_s9  ;;  %s67_s12 = int_to_ptr.vmem [resolvable:$true] %s66_s12 }
  0x37   :  { %s544_s15 = scalar_lea.hbm %s743_s2, 16 }
  0x38   :  { %p545_p10 = scmp.ne.s32.totalorder %s743_s2, %s544_s15  ;;  %p548_p11 = scmp.lt.u32.totalorder %s544_s15, %s743_s2 }
  0x3a   :  { %p550_p12 = pnand %p548_p11, %p545_p10 }
  0x3c   :  { %553 = shalt.err (!%p550_p12)
}
  0x3d   :  { %s554_s0 = scalar_lea.vmem %s45_s9, 16  ;;  %s558_s10 = scalar_lea.vmem %s45_s9, 32 }
  0x3e   :  { %p555_p13 = scmp.ne.s32.totalorder %s45_s9, %s554_s0  ;;  %p559_p0 = scmp.lt.s32.totalorder %s45_s9, %s45_s9 }
  0x3f   :  { %p560_p1 = scmp.lt.s32.totalorder %s558_s10, %s554_s0 }
  0x41   :  { %p561_p2 = por %p560_p1, %p559_p0 }
  0x43   :  { %p562_p3 = pnand %p561_p2, %p555_p13 }
  0x45   :  { %565 = shalt.err (!%p562_p3)
}
  0x46   :  { %47 = dma.hbm_to_vmem [thread:$0]  %s743_s2, 16, %s45_s9, [#allocation6]  }
  0x47   :  { %s566_s23 = scalar_lea.hbm %s745_s4, 16 }
  0x48   :  { %p567_p4 = scmp.ne.s32.totalorder %s745_s4, %s566_s23  ;;  %p570_p5 = scmp.lt.u32.totalorder %s566_s23, %s745_s4 }
  0x4a   :  { %p572_p6 = pnand %p570_p5, %p567_p4 }
  0x4c   :  { %575 = shalt.err (!%p572_p6)
}
  0x4d   :  { %s576_s3 = scalar_lea.vmem %s67_s12, 16  ;;  %s580_s30 = scalar_lea.vmem %s67_s12, 32 }
  0x4e   :  { %p577_p7 = scmp.ne.s32.totalorder %s67_s12, %s576_s3  ;;  %p581_p8 = scmp.lt.s32.totalorder %s67_s12, %s67_s12 }
  0x4f   :  { %p582_p9 = scmp.lt.s32.totalorder %s580_s30, %s576_s3 }
  0x51   :  { %p583_p10 = por %p582_p9, %p581_p8 }
  0x53   :  { %p584_p11 = pnand %p583_p10, %p577_p7 }
  0x55   :  { %587 = shalt.err (!%p584_p11)
}
  0x56   :  { %69 = dma.hbm_to_vmem [thread:$0]  %s745_s4, 16, %s67_s12, [#allocation9]  }
  0x57   :  { %610 = dma.done.wait [#allocation3], 256  }
  0x58   :  { %611 = vsyncadd [#allocation3], 4294967040 }
  0x59   :  { %612 = dma.done.wait [#allocation6], 1040  }
  0x5a   :  { %613 = vsyncadd [#allocation6], 4294966256 }
  0x5b   :  { %614 = dma.done.wait [#allocation9], 1040  }
  0x5c   :  { %615 = vsyncadd [#allocation9], 4294966256  ;;  %v627_v0 = vmov 0.0   ;;  %vm628_vm0 = vmmov 0   ;;  %v458_v1 = vld [vmem:[#allocation5] sm:$0xff]   ;;  %v459_v2 = vld [vmem:[#allocation5 + $0x8] sm:$0xff]  }
  0x5d   :  { %406 = vmatprep.subr.bf16.mxu0 %v627_v0  ;;  %422 = vmatprep.mubr.msk.bf16.mxu0 %vm628_vm0, %v627_v0  ;;  %v460_v3 = vld [vmem:[#allocation5 + $0x10] sm:$0xff]   ;;  %v461_v4 = vld [vmem:[#allocation5 + $0x18] sm:$0xff]   ;;  %v462_v5 = vld [vmem:[#allocation5 + $0x20] sm:$0xff]   ;;  %s629_s4 = smov [#allocation11]  }
  0x5e   :  { %426 = vmatprep.subr.bf16.mxu1 %v627_v0  ;;  %442 = vmatprep.mubr.msk.bf16.mxu1 %vm628_vm0, %v627_v0  ;;  %v463_v6 = vld [vmem:[#allocation5 + $0x28] sm:$0xff]   ;;  %v464_v7 = vld [vmem:[#allocation5 + $0x30] sm:$0xff]   ;;  %v465_v8 = vld [vmem:[#allocation5 + $0x38] sm:$0xff]   ;;  %s347_s7 = sshll.u32 %s629_s4, 4  ;;  %s348_s7 = int_to_ptr.vmem [resolvable:$true] %s347_s7 }
  0x5f   :  { %407 = vmatpush3.bf16.msra.mxu0 %v458_v1  ;;  %v86_v9 = vld [vmem:[#allocation2] sm:$0xff]  ;;  %v87_v10 = vld [vmem:[#allocation2 + $0x8] sm:$0xff]  ;;  %v466_v12 = vld [vmem:[#allocation8] sm:$0xff]   ;;  %s588_s8 = scalar_lea.vmem %s348_s7, 128  ;;  %p593_p13 = scmp.lt.s32.totalorder %s348_s7, %s348_s7 }
  0x60   :  { %408 = vmatprep.subr.bf16.mxu0 %v627_v0  ;;  %v88_v11 = vpack.c.bf16 %v87_v10, %v86_v9  ;;  %427 = vmatpush3.bf16.msra.mxu1 %v466_v12  ;;  %v467_v13 = vld [vmem:[#allocation8 + $0x8] sm:$0xff]   ;;  %v468_v14 = vld [vmem:[#allocation8 + $0x10] sm:$0xff]   ;;  %v469_v15 = vld [vmem:[#allocation8 + $0x18] sm:$0xff]   ;;  %p589_p12 = scmp.ne.s32.totalorder %s348_s7, %s588_s8  ;;  %p594_p0 = scmp.lt.s32.totalorder %s588_s8, %s588_s8 }
  0x61   :  { %428 = vmatprep.subr.bf16.mxu1 %v627_v0  ;;  %v470_v16 = vld [vmem:[#allocation8 + $0x20] sm:$0xff]   ;;  %v471_v17 = vld [vmem:[#allocation8 + $0x28] sm:$0xff]   ;;  %v472_v18 = vld [vmem:[#allocation8 + $0x30] sm:$0xff]  }
  0x62   :  { %v473_v19 = vld [vmem:[#allocation8 + $0x38] sm:$0xff]   ;;  %v370_v46 = vld [vmem:[#allocation10] ss:$0 sm:$0xff]  ;;  %p595_p1 = por %p594_p0, %p593_p13 }
  0x63   :  { %409 = vmatpush3.bf16.msra.mxu0 %v459_v2  ;;  %v361_v20 = vld [vmem:[#allocation7] ss:$0 sm:$0xff] }
  0x64   :  { %410 = vmatprep.subr.bf16.mxu0 %v627_v0  ;;  %429 = vmatpush3.bf16.msra.mxu1 %v467_v13  ;;  %p596_p2 = pnand %p595_p1, %p589_p12 }
  0x65   :  { %430 = vmatprep.subr.bf16.mxu1 %v627_v0 }
  0x67   :  { %411 = vmatpush3.bf16.msra.mxu0 %v460_v3 }
  0x68   :  { %412 = vmatprep.subr.bf16.mxu0 %v627_v0  ;;  %431 = vmatpush3.bf16.msra.mxu1 %v468_v14 }
  0x69   :  { %432 = vmatprep.subr.bf16.mxu1 %v627_v0 }
  0x6b   :  { %413 = vmatpush3.bf16.msra.mxu0 %v461_v4 }
  0x6c   :  { %414 = vmatprep.subr.bf16.mxu0 %v627_v0  ;;  %433 = vmatpush3.bf16.msra.mxu1 %v469_v15 }
  0x6d   :  { %434 = vmatprep.subr.bf16.mxu1 %v627_v0 }
  0x6f   :  { %415 = vmatpush3.bf16.msra.mxu0 %v462_v5 }
  0x70   :  { %416 = vmatprep.subr.bf16.mxu0 %v627_v0  ;;  %435 = vmatpush3.bf16.msra.mxu1 %v470_v16 }
  0x71   :  { %436 = vmatprep.subr.bf16.mxu1 %v627_v0 }
  0x73   :  { %417 = vmatpush3.bf16.msra.mxu0 %v463_v6 }
  0x74   :  { %418 = vmatprep.subr.bf16.mxu0 %v627_v0  ;;  %437 = vmatpush3.bf16.msra.mxu1 %v471_v17 }
  0x75   :  { %438 = vmatprep.subr.bf16.mxu1 %v627_v0 }
  0x77   :  { %419 = vmatpush3.bf16.msra.mxu0 %v464_v7 }
  0x78   :  { %420 = vmatprep.subr.bf16.mxu0 %v627_v0  ;;  %439 = vmatpush3.bf16.msra.mxu1 %v472_v18 }
  0x79   :  { %440 = vmatprep.subr.bf16.mxu1 %v627_v0 }
  0x7b   :  { %421 = vmatpush3.bf16.msra.mxu0 %v465_v8 }
  0x7c   :  { %441 = vmatpush3.bf16.msra.mxu1 %v473_v19 }
  0x7e   :  { %423 = vmatmul.mubr.bf16.vlgmr.msra.gmra.mrb[0].mxu0 %v88_v11 }
 0x151   :  { %v194_v21 = vpop.f32.mrb[0].mxu0 }
 0x152   :  { %v195_v22 = vadd.f32 %v361_v20, %v194_v21  ;;  %v424_v23 = vpop.f32.mrb[1].mxu0 }
 0x153   :  { %v197_v24 = vpop.f32.mrb[2].mxu0 }
 0x154   :  { %v203_v25 = vmul.f32 %v195_v22, %v195_v22  ;;  %v198_v26 = vadd.f32 %v361_v20, %v197_v24  ;;  %v425_v27 = vpop.f32.mrb[3].mxu0  ;;  %v201_v40 = vmul.f32 0.5, %v195_v22 }
 0x156   :  { %v205_v28 = vmul.f32 %v203_v25, %v195_v22  ;;  %v204_v29 = vmul.f32 %v198_v26, %v198_v26  ;;  %v202_v41 = vmul.f32 0.5, %v198_v26 }
 0x158   :  { %v207_v30 = vmul.f32 0.044715, %v205_v28  ;;  %v206_v31 = vmul.f32 %v204_v29, %v198_v26 }
 0x15a   :  { %v209_v32 = vadd.f32 %v207_v30, %v195_v22  ;;  %v208_v33 = vmul.f32 0.044715, %v206_v31 }
 0x15c   :  { %v211_v34 = vmul.f32 0.7978846, %v209_v32  ;;  %v210_v35 = vadd.f32 %v208_v33, %v198_v26 }
 0x15e   :  { %474 = vtanh.f32 %v211_v34  ;;  %v212_v36 = vmul.f32 0.7978846, %v210_v35 }
 0x160   :  { %476 = vtanh.f32 %v212_v36 }
 0x168   :  { %v475_v37 = vpop.eup %474 }
 0x169   :  { %v215_v38 = vadd.f32 1.0, %v475_v37 }
 0x16a   :  { %v477_v39 = vpop.eup %476 }
 0x16b   :  { %v216_v42 = vadd.f32 1.0, %v477_v39  ;;  %v217_v43 = vmul.f32 %v215_v38, %v201_v40 }
 0x16d   :  { %v218_v44 = vmul.f32 %v216_v42, %v202_v41 }
 0x16f   :  { %v219_v45 = vpack.c.bf16 %v218_v44, %v217_v43 }
 0x171   :  { %443 = vmatmul.mubr.bf16.vlgmr.msra.gmra.mrb[0].mxu1 %v219_v45 }
 0x244   :  { %v325_v47 = vpop.f32.mrb[0].mxu1 }
 0x245   :  { %v444_v48 = vpop.f32.mrb[1].mxu1  ;;  %v326_v50 = vadd.f32 %v370_v46, %v325_v47 }
 0x246   :  { %v328_v49 = vpop.f32.mrb[2].mxu1 }
 0x247   :  { %v329_v51 = vadd.f32 %v370_v46, %v328_v49  ;;  %v445_v52 = vpop.f32.mrb[3].mxu1 }
 0x249   :  { %v386_v53 = vpack.c.bf16 %v329_v51, %v326_v50 }
 0x24b   :  { %387 = vst [vmem:[#allocation11] sm:$0xff] %v386_v53  }
 0x24c   :  { %599 = shalt.err (!%p596_p2)
}
 0x24d   :  { %s600_s12 = scalar_lea.hbm %s746_s5, 128 }
 0x24e   :  { %p601_p3 = scmp.ne.s32.totalorder %s746_s5, %s600_s12  ;;  %p604_p4 = scmp.lt.u32.totalorder %s600_s12, %s746_s5 }
 0x250   :  { %p606_p5 = pnand %p604_p4, %p601_p3 }
 0x252   :  { %609 = shalt.err (!%p606_p5)
}
 0x253   :  { %353 = dma.vmem_to_hbm [thread:$0]  %s348_s7, 128, %s746_s5, [#allocation4], %s619_s28, %s619_s28, %s620_s29  }
 0x254   :  { %616 = dma.done.wait [#allocation4], 128  }
 0x255   :  { %617 = vsyncadd [#allocation4], 4294967168 }
 0x256   :  { %357 = vsyncpa [#allocation3], 1 }
 0x257   :  { %358 = vsyncpa [#allocation6], 1 }
 0x258   :  { %359 = vsyncpa [#allocation9], 1 }
 0x259   :  { %360 = vsyncpa [#allocation4], 1 }

</bundles_post_ra>
